<compile_context>
chip_gen: v6e
topology: v6e:2x2x1
jax: 0.10.0
libtpu: 0.0.40
codegen_flags: <defaults>
</compile_context>

<pallas_src>
import jax
import jax.numpy as jnp
from jax.experimental import pallas as pl
from jax.experimental.pallas import tpu as pltpu


def mlp_kernel(params_ref, x_ref, o_ref):
    """params_ref: (10,) f32 in SMEM = [w1_0..2, b1_0..2, w2_0..2, b2].
    x_ref / o_ref: (block_rows, lane) tiles in VMEM."""
    x = x_ref[...]

    w1_0 = params_ref[0]
    w1_1 = params_ref[1]
    w1_2 = params_ref[2]
    b1_0 = params_ref[3]
    b1_1 = params_ref[4]
    b1_2 = params_ref[5]
    w2_0 = params_ref[6]
    w2_1 = params_ref[7]
    w2_2 = params_ref[8]
    b2 = params_ref[9]

    # 3x (mul, add, max) + 3 mul + 3 add per element, f32 on the VPU.
    h0 = jnp.maximum(x * w1_0 + b1_0, 0.0)
    h1 = jnp.maximum(x * w1_1 + b1_1, 0.0)
    h2 = jnp.maximum(x * w1_2 + b1_2, 0.0)
    y = h0 * w2_0 + h1 * w2_1 + h2 * w2_2 + b2
    o_ref[...] = y.astype(o_ref.dtype)


def _round_up(a, b):
    return -(-a // b) * b


def _choose_lane(n):
    """Largest 128-multiple lane width that divides n (zero-copy path)."""
    for cand in (1024, 512, 256, 128):
        if n % cand == 0:
            return cand, False
    return 512, True  # no 128-multiple divides n -> pad the tail row


def _choose_block_rows(rows, lane, itemsize, tile_bytes, sub):
    """Pick block_rows: multiple of `sub` (or full extent), ~tile_bytes per
    tile, and >= 2 grid blocks whenever legal (v7x dual-TensorCore)."""
    if rows <= sub:
        return rows  # single full-extent block; cannot split legally
    max_rows = max(sub, (tile_bytes // (lane * itemsize)) // sub * sub)
    br = min(max_rows, (rows // sub) * sub)
    if pl.cdiv(rows, br) < 2:
        # Split into two blocks so both v7x TensorCores get work.
        br = max(sub, _round_up(pl.cdiv(rows, 2), sub))
    return br


def mlp_forward(x, w1, b1, w2, b2, *, lane_w=None, tile_bytes=2 * 1024 * 1024):
    """x: (N, 1); w1: (1, 3); b1: (1, 3); w2: (3, 1); b2: (1, 1)."""
    assert x.ndim == 2 and x.shape[1] == 1
    n = x.shape[0]
    dtype = x.dtype
    itemsize = jnp.dtype(dtype).itemsize
    # Min second-to-last tile multiple: 8 (f32), 16 (bf16), 32 (int8).
    sub = max(8, 32 // itemsize)

    # Pack the 10 scalar parameters into one SMEM array (no padded VMEM tiles).
    params = jnp.concatenate(
        [w1.reshape(-1), b1.reshape(-1), w2.reshape(-1), b2.reshape(-1)]
    ).astype(jnp.float32)  # (10,)

    if lane_w is None:
        lane, needs_pad = _choose_lane(n)
    else:
        if lane_w % 128 != 0:
            raise ValueError("lane_w must be a multiple of 128")
        lane = lane_w
        needs_pad = (n % lane) != 0

    rows = max(pl.cdiv(n, lane), 1)
    padded_n = rows * lane

    x_flat = x.reshape(-1)
    if needs_pad:
        # Ragged fallback: pad only up to one lane-row (< lane extra elements),
        # NOT up to a block multiple; the cdiv grid handles partial blocks.
        # TODO(synk): for large ragged N, process the divisible prefix
        # copy-free and only pad the (< lane) tail instead of padding x.
        x_flat = jnp.pad(x_flat, (0, padded_n - n))
    x2d = x_flat.reshape(rows, lane)  # free reshape on the fast path

    block_rows = _choose_block_rows(rows, lane, itemsize, tile_bytes, sub)
    num_blocks = pl.cdiv(rows, block_rows)

    out2d = pl.pallas_call(
        mlp_kernel,
        out_shape=jax.ShapeDtypeStruct((rows, lane), dtype),
        grid=(num_blocks,),
        in_specs=[
            pl.BlockSpec(memory_space=pltpu.MemorySpace.SMEM),    # params
            pl.BlockSpec((block_rows, lane), lambda i: (i, 0)),   # x tile
        ],
        out_specs=pl.BlockSpec((block_rows, lane), lambda i: (i, 0)),
        compiler_params=pltpu.CompilerParams(
            dimension_semantics=("parallel",),
        ),
    )(params, x2d)

    if needs_pad:
        return out2d.reshape(-1)[:n].reshape(n, 1)
    return out2d.reshape(n, 1)  # free reshape, exact-shape output


def init_params(key):
    # Mimic torch.nn.Linear default init: U(-1/sqrt(fan_in), 1/sqrt(fan_in)).
    k1, k2, k3, k4 = jax.random.split(key, 4)
    bound1 = 1.0 / jnp.sqrt(1.0)   # fan_in = 1
    bound2 = 1.0 / jnp.sqrt(3.0)   # fan_in = 3
    w1 = jax.random.uniform(k1, (1, 3), jnp.float32, -bound1, bound1)  # (in, out)
    b1 = jax.random.uniform(k2, (1, 3), jnp.float32, -bound1, bound1)
    w2 = jax.random.uniform(k3, (3, 1), jnp.float32, -bound2, bound2)
    b2 = jax.random.uniform(k4, (1, 1), jnp.float32, -bound2, bound2)
    return w1, b1, w2, b2


if __name__ == "__main__":
    key = jax.random.PRNGKey(0)
    kx, kp = jax.random.split(key)
    w1, b1, w2, b2 = init_params(kp)

    def ref_fn(x):
        return jnp.maximum(x @ w1 + b1, 0.0) @ w2 + b2

    fwd = jax.jit(mlp_forward, static_argnames=("lane_w", "tile_bytes"))

    # 1) Small batch (= module-scale input): ragged pad-fallback, single tile.
    batch = 8
    x = jax.random.normal(kx, (batch, 1), jnp.float32)
    y = fwd(x, w1, b1, w2, b2)
    jax.block_until_ready(y)
    assert y.shape == (batch, 1)
    assert jnp.allclose(y, ref_fn(x), atol=1e-5, rtol=1e-5)

    # 2) 128-divisible batch: zero-copy fast path (pure reshapes, no pad/slice),
    #    >=2 "parallel" blocks with a partial last block handled by the grid.
    batch2 = 10240
    x2 = jax.random.normal(jax.random.fold_in(kx, 1), (batch2, 1), jnp.float32)
    y2 = fwd(x2, w1, b1, w2, b2)
    jax.block_until_ready(y2)
    assert y2.shape == (batch2, 1)
    assert jnp.allclose(y2, ref_fn(x2), atol=1e-5, rtol=1e-5)

    # 3) Ragged non-128-multiple batch with forced small lanes: pad fallback +
    #    multi-block grid + partial last block, end to end.
    batch3 = 1537
    x3 = jax.random.normal(jax.random.fold_in(kx, 2), (batch3, 1), jnp.float32)
    y3 = fwd(x3, w1, b1, w2, b2, lane_w=128)
    jax.block_until_ready(y3)
    assert y3.shape == (batch3, 1)
    assert jnp.allclose(y3, ref_fn(x3), atol=1e-5, rtol=1e-5)

    print("KERNEL_OK")
</pallas_src>

<mosaic_0001>
module attributes {stable_mosaic.version = 11 : i64} {
  func.func @mlp_kernel(%arg0: i32, %arg1: memref<10xf32, #tpu.memory_space<smem>>, %arg2: memref<1x512xf32, #tpu.memory_space<vmem>>, %arg3: memref<1x512xf32, #tpu.memory_space<vmem>>) attributes {dimension_semantics = [#tpu.dimension_semantics<parallel>], iteration_bounds = array<i64: 1>, scalar_prefetch = 0 : i64, scratch_operands = 0 : i64, tpu.core_type = #tpu.core_type<tc>, window_params = [{transform_indices = @transform_0, window_bounds = array<i64: 10>}, {transform_indices = @transform_1, window_bounds = array<i64: 1, 512>}, {transform_indices = @transform_2, window_bounds = array<i64: 1, 512>}]} {
    %c0 = arith.constant 0 : index
    %c0_0 = arith.constant 0 : index
    %0 = vector.load %arg2[%c0, %c0_0] : memref<1x512xf32, #tpu.memory_space<vmem>>, vector<1x512xf32>
    %c0_1 = arith.constant 0 : index
    %1 = memref.load %arg1[%c0_1] : memref<10xf32, #tpu.memory_space<smem>>
    %c1 = arith.constant 1 : index
    %2 = memref.load %arg1[%c1] : memref<10xf32, #tpu.memory_space<smem>>
    %c2 = arith.constant 2 : index
    %3 = memref.load %arg1[%c2] : memref<10xf32, #tpu.memory_space<smem>>
    %c3 = arith.constant 3 : index
    %4 = memref.load %arg1[%c3] : memref<10xf32, #tpu.memory_space<smem>>
    %c4 = arith.constant 4 : index
    %5 = memref.load %arg1[%c4] : memref<10xf32, #tpu.memory_space<smem>>
    %c5 = arith.constant 5 : index
    %6 = memref.load %arg1[%c5] : memref<10xf32, #tpu.memory_space<smem>>
    %c6 = arith.constant 6 : index
    %7 = memref.load %arg1[%c6] : memref<10xf32, #tpu.memory_space<smem>>
    %c7 = arith.constant 7 : index
    %8 = memref.load %arg1[%c7] : memref<10xf32, #tpu.memory_space<smem>>
    %c8 = arith.constant 8 : index
    %9 = memref.load %arg1[%c8] : memref<10xf32, #tpu.memory_space<smem>>
    %c9 = arith.constant 9 : index
    %10 = memref.load %arg1[%c9] : memref<10xf32, #tpu.memory_space<smem>>
    %11 = vector.broadcast %1 : f32 to vector<1x512xf32>
    %12 = arith.mulf %0, %11 : vector<1x512xf32>
    %13 = vector.broadcast %4 : f32 to vector<1x512xf32>
    %14 = arith.addf %12, %13 : vector<1x512xf32>
    %cst = arith.constant 0.000000e+00 : f32
    %15 = vector.broadcast %cst : f32 to vector<1x512xf32>
    %16 = arith.maximumf %14, %15 : vector<1x512xf32>
    %17 = vector.broadcast %2 : f32 to vector<1x512xf32>
    %18 = arith.mulf %0, %17 : vector<1x512xf32>
    %19 = vector.broadcast %5 : f32 to vector<1x512xf32>
    %20 = arith.addf %18, %19 : vector<1x512xf32>
    %cst_2 = arith.constant 0.000000e+00 : f32
    %21 = vector.broadcast %cst_2 : f32 to vector<1x512xf32>
    %22 = arith.maximumf %20, %21 : vector<1x512xf32>
    %23 = vector.broadcast %3 : f32 to vector<1x512xf32>
    %24 = arith.mulf %0, %23 : vector<1x512xf32>
    %25 = vector.broadcast %6 : f32 to vector<1x512xf32>
    %26 = arith.addf %24, %25 : vector<1x512xf32>
    %cst_3 = arith.constant 0.000000e+00 : f32
    %27 = vector.broadcast %cst_3 : f32 to vector<1x512xf32>
    %28 = arith.maximumf %26, %27 : vector<1x512xf32>
    %29 = vector.broadcast %7 : f32 to vector<1x512xf32>
    %30 = arith.mulf %16, %29 : vector<1x512xf32>
    %31 = vector.broadcast %8 : f32 to vector<1x512xf32>
    %32 = arith.mulf %22, %31 : vector<1x512xf32>
    %33 = arith.addf %30, %32 : vector<1x512xf32>
    %34 = vector.broadcast %9 : f32 to vector<1x512xf32>
    %35 = arith.mulf %28, %34 : vector<1x512xf32>
    %36 = arith.addf %33, %35 : vector<1x512xf32>
    %37 = vector.broadcast %10 : f32 to vector<1x512xf32>
    %38 = arith.addf %36, %37 : vector<1x512xf32>
    %c0_4 = arith.constant 0 : index
    %c0_5 = arith.constant 0 : index
    %39 = vector.load %arg3[%c0_4, %c0_5] : memref<1x512xf32, #tpu.memory_space<vmem>>, vector<1x512xf32>
    tpu.vector_store %arg3[%c0_4, %c0_5], %38 {strides = array<i32>} : memref<1x512xf32, #tpu.memory_space<vmem>>, vector<1x512xf32>,
    return
  }
  func.func @transform_0(%arg0: i32) -> i32 {
    %c0_i32 = arith.constant 0 : i32
    %c0_i32_0 = arith.constant 0 : i32
    return %c0_i32 : i32
  }
  func.func @transform_1(%arg0: i32) -> (i32, i32) {
    %c0_i32 = arith.constant 0 : i32
    %c0_i32_0 = arith.constant 0 : i32
    return %arg0, %c0_i32 : i32, i32
  }
  func.func @transform_2(%arg0: i32) -> (i32, i32) {
    %c0_i32 = arith.constant 0 : i32
    %c0_i32_0 = arith.constant 0 : i32
    return %arg0, %c0_i32 : i32, i32
  }
}

</mosaic_0001>

<bundles_post_ra>
// kernel: mlp_forward.1
= control target key start
LH: loop header
LB: loop body
LE: loop exit
PB: predicated region body
PF: predicated region fallthrough
CT: control target
= control target key end

     0   :  { %7 = vsyncpa [#allocation3], 0  ;;  %s119_s0 = inlined_call_operand.vmem [shape: f32[10], index: 0, kind: input, shape index: {}]   ;;  %s120_s1 = inlined_call_operand.vmem [shape: f32[1,512], index: 1, kind: input, shape index: {}]   ;;  %s121_s2 = inlined_call_operand.vmem [shape: f32[1,512], index: 2, kind: output, shape index: {}]  }
   0x1   :  { %s14_s11 = sshll.u32 %s119_s0, 4  ;;  %s15_s11 = int_to_ptr.vmem [resolvable:$true] %s14_s11 }
   0x2   :  { %s80_s12 = scalar_lea.vmem %s15_s11, 16  ;;  %p85_p1 = scmp.lt.s32.totalorder %s15_s11, %s15_s11 }
   0x3   :  { %p81_p0 = scmp.ne.s32.totalorder %s15_s11, %s80_s12  ;;  %p86_p2 = scmp.lt.s32.totalorder %s80_s12, %s80_s12 }
   0x5   :  { %p87_p3 = por %p86_p2, %p85_p1 }
   0x7   :  { %p88_p4 = pnand %p87_p3, %p81_p0 }
   0x9   :  { %91 = shalt.err (!%p88_p4)
}
   0xa   :  { %s94_s13 = smov [#allocation2]  }
   0xb   :  { %17 = dma.vmem_to_smem %s15_s11, 16, %s94_s13, [#allocation3]  }
   0xc   :  { %92 = dma.done.wait [#allocation3], 16  }
   0xd   :  { %93 = vsyncadd [#allocation3], 4294967280 }
   0xe   :  { %23 = sfence }
   0xf   :  { %s25_s14 = sld [smem:[#allocation2]]  ;;  %v24_v0 = vld [vmem:[%s120_s1] sm:$0xf]  ;;  %v60_v22 = vlaneseq }
  0x10   :  { %s70_s15 = sld [smem:[#allocation2 + $0x1]] }
  0x11   :  { %s71_s16 = sld [smem:[#allocation2 + $0x2]]  ;;  %vm62_vm0 = vcmp.lt.s32.totalorder %v60_v22, 512 }
  0x12   :  { %s72_s17 = sld [smem:[#allocation2 + $0x3]] }
  0x13   :  { %s73_s0 = sld [smem:[#allocation2 + $0x4]] }
  0x14   :  { %s74_s20 = sld [smem:[#allocation2 + $0x5]] }
  0x15   :  { %s75_s21 = sld [smem:[#allocation2 + $0x6]]  ;;  %v35_v1 = vstv %s25_s14 }
  0x16   :  { %s76_s22 = sld [smem:[#allocation2 + $0x7]]  ;;  %v36_v2 = vmul.f32 %v35_v1, %v24_v0  ;;  %v40_v3 = vstv %s70_s15 }
  0x17   :  { %s77_s23 = sld [smem:[#allocation2 + $0x8]]  ;;  %v41_v4 = vmul.f32 %v40_v3, %v24_v0  ;;  %v45_v5 = vstv %s71_s16 }
  0x18   :  { %v37_v6 = vstv %s72_s17  ;;  %v46_v7 = vmul.f32 %v45_v5, %v24_v0  ;;  %s78_s24 = sld [smem:[#allocation2 + $0x9]] }
  0x19   :  { %v38_v8 = vadd.f32 %v37_v6, %v36_v2  ;;  %v42_v9 = vstv %s73_s0 }
  0x1a   :  { %v43_v10 = vadd.f32 %v42_v9, %v41_v4  ;;  %v47_v11 = vstv %s74_s20 }
  0x1b   :  { %v39_v12 = vmax.f32 %v38_v8, 0.0  ;;  %v48_v13 = vadd.f32 %v47_v11, %v46_v7  ;;  %v50_v14 = vstv %s75_s21 }
  0x1c   :  { %v44_v15 = vmax.f32 %v43_v10, 0.0  ;;  %v52_v16 = vstv %s76_s22 }
  0x1d   :  { %v49_v17 = vmax.f32 %v48_v13, 0.0  ;;  %v51_v18 = vmul.f32 %v50_v14, %v39_v12  ;;  %v55_v19 = vstv %s77_s23 }
  0x1e   :  { %v53_v20 = vmul.f32 %v52_v16, %v44_v15  ;;  %v58_v24 = vstv %s78_s24 }
  0x1f   :  { %v56_v21 = vmul.f32 %v55_v19, %v49_v17 }
  0x20   :  { %v54_v23 = vadd.f32 %v53_v20, %v51_v18 }
  0x22   :  { %v57_v25 = vadd.f32 %v56_v21, %v54_v23 }
  0x24   :  { %v59_v26 = vadd.f32 %v58_v24, %v57_v25 }
  0x26   :  { %64 = vst.msk [vmem:[%s121_s2] sm:$0xf] %vm62_vm0, %v59_v26 }
  0x27   :  { %69 = vsyncpa [#allocation3], 1 }

</bundles_post_ra>
